<compile_context>
chip_gen: v5e
topology: v5e:2x2
jax: 0.10.0
libtpu: 0.0.40
codegen_flags: <defaults>
</compile_context>

<pallas_src>
import functools
import math

import jax
import jax.numpy as jnp
from jax import lax
from jax.experimental import pallas as pl
from jax.experimental.pallas import tpu as pltpu


def _round_up(x, m):
    return ((x + m - 1) // m) * m


_VMEM_LIMIT_CACHE = None


def _vmem_limit_bytes():
    """Per-generation VMEM budget (v7x has 64 MiB/TC, v5e/v6e have 128 MiB)."""
    global _VMEM_LIMIT_CACHE
    if _VMEM_LIMIT_CACHE is None:
        limit = 48 * 1024 * 1024  # safe fallback on every generation
        try:
            cap = getattr(pltpu.get_tpu_info(), "vmem_capacity_bytes", None)
            if cap:
                limit = int(min(cap * 3 // 4, 96 * 1024 * 1024))
        except Exception:
            pass
        _VMEM_LIMIT_CACHE = limit
    return _VMEM_LIMIT_CACHE


# ----------------------------------------------------------------------------
# Tiled linear kernel: y = x @ w + b   (bf16 MXU operands, fp32 accumulator)
# ----------------------------------------------------------------------------
def _linear_kernel(x_ref, w_ref, b_ref, o_ref, acc_ref):
    k = pl.program_id(2)

    @pl.when(k == 0)
    def _init():
        acc_ref[...] = jnp.zeros_like(acc_ref)

    x = x_ref[...]
    w = w_ref[...]
    if x.dtype != jnp.bfloat16:
        x = x.astype(jnp.bfloat16)
    if w.dtype != jnp.bfloat16:
        w = w.astype(jnp.bfloat16)
    acc_ref[...] += jnp.dot(x, w, preferred_element_type=jnp.float32)

    @pl.when(k == pl.num_programs(2) - 1)
    def _finalize():
        o_ref[...] = (acc_ref[...] + b_ref[...].astype(jnp.float32)).astype(o_ref.dtype)


def _pick_tile(dim, preferred):
    """Largest tile <= preferred that divides dim (power-of-2 halving), else full dim."""
    if dim <= preferred:
        return dim
    t = preferred
    while t >= 8:
        if dim % t == 0:
            return t
        t //= 2
    return dim


def pallas_linear(x2d, w, b, *, tm=256, tn=256, tk=512, out_dtype=None):
    """y = x2d @ w + b.   x2d: (M, K), w: (K, N), b: (N,)."""
    M, K = x2d.shape
    N = w.shape[1]
    out_dtype = out_dtype if out_dtype is not None else x2d.dtype
    tm = _pick_tile(M, tm)
    tn = _pick_tile(N, tn)
    tk = _pick_tile(K, tk)
    # v7x has 2 TensorCores: for decode-sized M, try to expose >= 2 parallel blocks.
    if (M // tm) * (N // tn) < 2 and tn >= 256 and N % (tn // 2) == 0:
        tn //= 2
    grid = (M // tm, N // tn, K // tk)
    return pl.pallas_call(
        _linear_kernel,
        out_shape=jax.ShapeDtypeStruct((M, N), out_dtype),
        grid=grid,
        in_specs=[
            pl.BlockSpec((tm, tk), lambda i, j, k: (i, k)),
            pl.BlockSpec((tk, tn), lambda i, j, k: (k, j)),
            pl.BlockSpec((1, tn), lambda i, j, k: (0, j)),
        ],
        out_specs=pl.BlockSpec((tm, tn), lambda i, j, k: (i, j)),
        scratch_shapes=[pltpu.VMEM((tm, tn), jnp.float32)],
        compiler_params=pltpu.CompilerParams(
            dimension_semantics=("parallel", "parallel", "arbitrary"),
            vmem_limit_bytes=_vmem_limit_bytes(),
        ),
    )(x2d, w, b.reshape(1, N))


# ----------------------------------------------------------------------------
# Flash-style causal attention: GQA group packing + triangular grid
# ----------------------------------------------------------------------------
def _flash_attn_kernel(i_map_ref, j_map_ref, q_ref, k_ref, v_ref, o_ref,
                       m_sc, l_sc, acc_sc, *, scale, bq, bk, q_per_kv):
    t = pl.program_id(2)
    i = i_map_ref[t]  # query block index (from scalar-prefetched step list)
    j = j_map_ref[t]  # key/value block index

    @pl.when(j == 0)
    def _init():
        m_sc[...] = jnp.full_like(m_sc, -jnp.inf)
        l_sc[...] = jnp.zeros_like(l_sc)
        acc_sc[...] = jnp.zeros_like(acc_sc)

    def _update(masked):
        k = k_ref[...]
        v = v_ref[...]
        if k.dtype != jnp.bfloat16:
            k = k.astype(jnp.bfloat16)
        if v.dtype != jnp.bfloat16:
            v = v.astype(jnp.bfloat16)
        if masked:
            row = i * bq + lax.broadcasted_iota(jnp.int32, (bq, bk), 0)
            col = j * bk + lax.broadcasted_iota(jnp.int32, (bq, bk), 1)
            allow = col <= row
        # One K/V fetch serves all q_per_kv heads of the group (static unroll).
        for h in range(q_per_kv):
            # scale folded into the (bq, hs) q tile, not the (bq, bk) scores
            q_h = (q_ref[h] * scale).astype(jnp.bfloat16)
            s = lax.dot_general(q_h, k, (((1,), (1,)), ((), ())),
                                preferred_element_type=jnp.float32)     # (bq, bk)
            if masked:
                s = jnp.where(allow, s, -jnp.inf)
            m_prev = m_sc[h]
            m_new = jnp.maximum(m_prev, jnp.max(s, axis=-1, keepdims=True))
            alpha = jnp.exp(m_prev - m_new)
            p = jnp.exp(s - m_new)
            l_sc[h] = alpha * l_sc[h] + jnp.sum(p, axis=-1, keepdims=True)
            acc_sc[h] = alpha * acc_sc[h] + jnp.dot(
                p.astype(jnp.bfloat16), v, preferred_element_type=jnp.float32)
            m_sc[h] = m_new

    # Only blocks straddling the diagonal need the iota mask.
    needs_mask = (j * bk + bk - 1) > (i * bq)

    @pl.when(needs_mask)
    def _masked():
        _update(True)

    @pl.when(jnp.logical_not(needs_mask))
    def _unmasked():
        _update(False)

    # Finalize at the diagonal (the last KV block visited for this q block).
    is_last = (j + 1) * bk >= (i + 1) * bq

    @pl.when(is_last)
    def _finalize():
        o_ref[...] = (acc_sc[...] *
                      pl.reciprocal(l_sc[...], approx=True)).astype(o_ref.dtype)


def pallas_flash_attention(q, k, v, scale, *, block_q=256, block_kv=128):
    """q: (B, n_head, T, hs); k, v: (B, n_query_groups, T, hs) -> (B, n_head, T, hs)."""
    B, H, T, hs = q.shape
    G = k.shape[1]
    q_per_kv = H // G
    assert block_q % block_kv == 0

    if T <= block_kv:
        bq = bk = _round_up(T, 8)
    else:
        bq, bk = block_q, block_kv
    T_pad = _round_up(T, bq)
    if T_pad != T:
        # Right-padding of K/V is masked out for real rows by the causal mask;
        # padded query rows are sliced off below.  Never builds an O(T^2) tile.
        pad = ((0, 0), (0, 0), (0, T_pad - T), (0, 0))
        q = jnp.pad(q, pad)
        k = jnp.pad(k, pad)
        v = jnp.pad(v, pad)

    # Flattened lower-triangular (i, j) step list (skips fully-masked blocks).
    steps_i, steps_j = [], []
    for i in range(T_pad // bq):
        j_last = ((i + 1) * bq - 1) // bk
        for j in range(j_last + 1):
            steps_i.append(i)
            steps_j.append(j)
    i_map = jnp.asarray(steps_i, dtype=jnp.int32)
    j_map = jnp.asarray(steps_j, dtype=jnp.int32)
    n_steps = len(steps_i)

    kernel = functools.partial(_flash_attn_kernel, scale=scale, bq=bq, bk=bk,
                               q_per_kv=q_per_kv)
    out = pl.pallas_call(
        kernel,
        out_shape=jax.ShapeDtypeStruct((B, H, T_pad, hs), q.dtype),
        grid_spec=pltpu.PrefetchScalarGridSpec(
            num_scalar_prefetch=2,
            grid=(B, G, n_steps),
            in_specs=[
                # all q_per_kv heads of group g in one block (K/V fetched once/group)
                pl.BlockSpec((None, q_per_kv, bq, hs),
                             lambda b, g, t, im, jm: (b, g, im[t], 0)),
                pl.BlockSpec((None, None, bk, hs),
                             lambda b, g, t, im, jm: (b, g, jm[t], 0)),
                pl.BlockSpec((None, None, bk, hs),
                             lambda b, g, t, im, jm: (b, g, jm[t], 0)),
            ],
            out_specs=pl.BlockSpec((None, q_per_kv, bq, hs),
                                   lambda b, g, t, im, jm: (b, g, im[t], 0)),
            scratch_shapes=[
                pltpu.VMEM((q_per_kv, bq, 1), jnp.float32),   # running max m
                pltpu.VMEM((q_per_kv, bq, 1), jnp.float32),   # running sum l
                pltpu.VMEM((q_per_kv, bq, hs), jnp.float32),  # unnormalized acc
            ],
        ),
        compiler_params=pltpu.CompilerParams(
            dimension_semantics=("parallel", "parallel", "arbitrary"),
            vmem_limit_bytes=_vmem_limit_bytes(),
        ),
    )(i_map, j_map, q, k, v)
    if T_pad != T:
        out = out[:, :, :T, :]
    return out


# ----------------------------------------------------------------------------
# Plain-JAX glue (matches the PyTorch forward, input_pos=None / mask=None path)
# ----------------------------------------------------------------------------
def apply_rope(x, cos, sin):
    hs = x.shape[-1]
    x1 = x[..., : hs // 2]
    x2 = x[..., hs // 2:]
    rotated = jnp.concatenate((-x2, x1), axis=-1)
    return (x * cos + rotated * sin).astype(x.dtype)


def causal_self_attention_forward(params, x, cos, sin, cfg, *,
                                  attn_block_q=256, attn_block_kv=128):
    B, T, C = x.shape
    n_head = cfg["n_head"]
    n_qg = cfg["n_query_groups"]
    hs = cfg["head_size"]
    rope_n = cfg["rope_n_elem"]
    q_per_kv = n_head // n_qg
    total_qkv = q_per_kv + 2

    # qkv projection (tiled Pallas matmul, bf16 weights, fp32 out for RoPE)
    qkv = pallas_linear(x.reshape(B * T, C), params["attn_w"], params["attn_b"],
                        out_dtype=jnp.float32)
    qkv = qkv.reshape(B, T, n_qg, total_qkv, hs)
    qkv = jnp.transpose(qkv, (0, 2, 3, 1, 4))            # (B, n_qg, total_qkv, T, hs)

    q = qkv[:, :, :q_per_kv].reshape(B, n_head, T, hs)   # (B, n_head, T, hs)
    k = qkv[:, :, q_per_kv]                              # (B, n_qg, T, hs) (no GQA expand)
    v = qkv[:, :, q_per_kv + 1]                          # (B, n_qg, T, hs)

    # RoPE on the first rope_n elements (identical per-group => apply pre-expand)
    q = jnp.concatenate((apply_rope(q[..., :rope_n], cos, sin), q[..., rope_n:]), axis=-1)
    k = jnp.concatenate((apply_rope(k[..., :rope_n], cos, sin), k[..., rope_n:]), axis=-1)

    # one bf16 downcast (fuses into the rope elementwise pass) halves q/k/v HBM traffic
    q = q.astype(jnp.bfloat16)
    k = k.astype(jnp.bfloat16)
    v = v.astype(jnp.bfloat16)

    # flash-style causal attention (Pallas kernel, GQA group packing + tri grid)
    scale = 1.0 / math.sqrt(hs)
    y = pallas_flash_attention(q, k, v, scale,
                               block_q=attn_block_q, block_kv=attn_block_kv)

    # y.transpose(1, 2).reshape(B, T, n_head * hs)
    y = jnp.transpose(y, (0, 2, 1, 3)).reshape(B * T, n_head * hs)

    # output projection (tiled Pallas matmul, bf16 in, fp32 out)
    out = pallas_linear(y, params["proj_w"], params["proj_b"], out_dtype=x.dtype)
    return out.reshape(B, T, C)


# ----------------------------------------------------------------------------
# Pure-JAX reference (fp32) for correctness check
# ----------------------------------------------------------------------------
def reference_forward(params, x, cos, sin, cfg):
    B, T, C = x.shape
    n_head, n_qg, hs, rope_n = (cfg["n_head"], cfg["n_query_groups"],
                                cfg["head_size"], cfg["rope_n_elem"])
    q_per_kv = n_head // n_qg
    qkv = x.reshape(B * T, C) @ params["attn_w"] + params["attn_b"]
    qkv = qkv.reshape(B, T, n_qg, q_per_kv + 2, hs)
    qkv = jnp.transpose(qkv, (0, 2, 3, 1, 4))
    q = qkv[:, :, :q_per_kv]
    k = jnp.broadcast_to(qkv[:, :, q_per_kv:q_per_kv + 1], (B, n_qg, q_per_kv, T, hs))
    v = jnp.broadcast_to(qkv[:, :, q_per_kv + 1:], (B, n_qg, q_per_kv, T, hs))
    q = q.reshape(B, n_head, T, hs)
    k = k.reshape(B, n_head, T, hs)
    v = v.reshape(B, n_head, T, hs)
    q = jnp.concatenate((apply_rope(q[..., :rope_n], cos, sin), q[..., rope_n:]), axis=-1)
    k = jnp.concatenate((apply_rope(k[..., :rope_n], cos, sin), k[..., rope_n:]), axis=-1)
    scale = 1.0 / math.sqrt(hs)
    s = jnp.einsum("bhqd,bhkd->bhqk", q, k) * scale
    mask = jnp.tril(jnp.ones((T, T), dtype=bool))
    s = jnp.where(mask, s, -jnp.inf)
    p = jax.nn.softmax(s, axis=-1)
    y = jnp.einsum("bhqk,bhkd->bhqd", p, v)
    y = jnp.transpose(y, (0, 2, 1, 3)).reshape(B, T, n_head * hs)
    return (y.reshape(B * T, n_head * hs) @ params["proj_w"] + params["proj_b"]).reshape(B, T, C)


# ----------------------------------------------------------------------------
# Main
# ----------------------------------------------------------------------------
if __name__ == "__main__":
    # Small config consistent with the module:
    #   n_embd=32, n_head=4, n_query_groups=2 (GQA), head_size=8,
    #   rotary_percentage=0.25 -> rope_n_elem=2, B=2, T=16
    cfg = dict(n_embd=32, n_head=4, n_query_groups=2, head_size=8, rope_n_elem=2)
    B, T, C = 2, 16, cfg["n_embd"]
    hs, n_head, n_qg = cfg["head_size"], cfg["n_head"], cfg["n_query_groups"]
    qkv_out = (n_head + 2 * n_qg) * hs

    key = jax.random.PRNGKey(0)
    k_x, k_aw, k_ab, k_pw, k_pb = jax.random.split(key, 5)

    # nn.Linear shapes (stored transposed for x @ w); weights kept bf16 in HBM.
    params = {
        "attn_w": (jax.random.normal(k_aw, (C, qkv_out), jnp.float32) * 0.02).astype(jnp.bfloat16),
        "attn_b": jax.random.normal(k_ab, (qkv_out,), jnp.float32) * 0.02,
        "proj_w": (jax.random.normal(k_pw, (n_head * hs, C), jnp.float32) * 0.02).astype(jnp.bfloat16),
        "proj_b": jax.random.normal(k_pb, (C,), jnp.float32) * 0.02,
    }
    # fp32 reference uses the same (bf16-rounded) weight values.
    ref_params = {name: val.astype(jnp.float32) for name, val in params.items()}

    x = jax.random.normal(k_x, (B, T, C), jnp.float32)

    # RoPE cache (litgpt build_rope_cache style), shape (T, rope_n_elem).
    rope_n = cfg["rope_n_elem"]
    theta = 1.0 / (10000.0 ** (jnp.arange(0, rope_n, 2, dtype=jnp.float32) / rope_n))
    idx_theta = jnp.outer(jnp.arange(T, dtype=jnp.float32), theta)
    idx_theta = jnp.tile(idx_theta, (1, 2))            # (T, rope_n_elem)
    cos = jnp.cos(idx_theta)
    sin = jnp.sin(idx_theta)

    ref = reference_forward(ref_params, x, cos, sin, cfg)

    # Default block sizes (single diagonal block for T=16).
    out = causal_self_attention_forward(params, x, cos, sin, cfg)
    out = jax.block_until_ready(out)
    assert out.shape == (B, T, C)
    assert jnp.allclose(out, ref, rtol=2e-3, atol=2e-3), "mismatch vs reference (default blocks)"

    # Small blocks: exercises the triangular grid, the unmasked off-diagonal fast
    # path, per-row init/finalize and scratch persistence across grid steps.
    out_small = causal_self_attention_forward(params, x, cos, sin, cfg,
                                              attn_block_q=8, attn_block_kv=8)
    out_small = jax.block_until_ready(out_small)
    assert jnp.allclose(out_small, ref, rtol=2e-3, atol=2e-3), "mismatch vs reference (small blocks)"

    print("KERNEL_OK")
</pallas_src>

<mosaic_0001>
module attributes {stable_mosaic.version = 11 : i64} {
  func.func @_linear_kernel(%arg0: i32, %arg1: i32, %arg2: i32, %arg3: memref<32x32xf32, #tpu.memory_space<vmem>>, %arg4: memref<32x64xbf16, #tpu.memory_space<vmem>>, %arg5: memref<1x64xf32, #tpu.memory_space<vmem>>, %arg6: memref<32x64xf32, #tpu.memory_space<vmem>>, %arg7: memref<32x64xf32, #tpu.memory_space<vmem>>) attributes {dimension_semantics = [#tpu.dimension_semantics<parallel>, #tpu.dimension_semantics<parallel>, #tpu.dimension_semantics<arbitrary>], iteration_bounds = array<i64: 1, 1, 1>, scalar_prefetch = 0 : i64, scratch_operands = 1 : i64, tpu.core_type = #tpu.core_type<tc>, window_params = [{transform_indices = @transform_0, window_bounds = array<i64: 32, 32>}, {transform_indices = @transform_1, window_bounds = array<i64: 32, 64>}, {transform_indices = @transform_2, window_bounds = array<i64: 1, 64>}, {transform_indices = @transform_3, window_bounds = array<i64: 32, 64>}]} {
    %c0_i32 = arith.constant 0 : i32
    %0 = arith.cmpi eq, %arg2, %c0_i32 : i32
    %1 = arith.extui %0 : i1 to i32
    %c0_i32_0 = arith.constant 0 : i32
    %2 = arith.cmpi ne, %1, %c0_i32_0 : i32
    scf.if %2 {
      %cst_10 = arith.constant 0.000000e+00 : f32
      %13 = vector.broadcast %cst_10 : f32 to vector<32x64xf32>
      %c0_11 = arith.constant 0 : index
      %c0_12 = arith.constant 0 : index
      %14 = vector.load %arg7[%c0_11, %c0_12] : memref<32x64xf32, #tpu.memory_space<vmem>>, vector<32x64xf32>
      tpu.vector_store %arg7[%c0_11, %c0_12], %13 {strides = array<i32>} : memref<32x64xf32, #tpu.memory_space<vmem>>, vector<32x64xf32>,
    } else {
    }
    %c0 = arith.constant 0 : index
    %c0_1 = arith.constant 0 : index
    %3 = vector.load %arg3[%c0, %c0_1] : memref<32x32xf32, #tpu.memory_space<vmem>>, vector<32x32xf32>
    %c0_2 = arith.constant 0 : index
    %c0_3 = arith.constant 0 : index
    %4 = vector.load %arg4[%c0_2, %c0_3] : memref<32x64xbf16, #tpu.memory_space<vmem>>, vector<32x64xbf16>
    %5 = arith.truncf %3 : vector<32x32xf32> to vector<32x32xbf16>
    %c0_4 = arith.constant 0 : index
    %c0_5 = arith.constant 0 : index
    %6 = vector.load %arg7[%c0_4, %c0_5] : memref<32x64xf32, #tpu.memory_space<vmem>>, vector<32x64xf32>
    %cst = arith.constant dense<0.000000e+00> : vector<32x64xf32>
    %7 = tpu.matmul %5, %4, %cst {dimension_numbers = #tpu.dot_dimension_numbers<[1], [0], [0], [1], [0, 0, 1, 1], [], []>} : vector<32x32xbf16>, vector<32x64xbf16>, vector<32x64xf32> -> vector<32x64xf32>
    %8 = arith.addf %6, %7 : vector<32x64xf32>
    %c0_6 = arith.constant 0 : index
    %c0_7 = arith.constant 0 : index
    %9 = vector.load %arg7[%c0_6, %c0_7] : memref<32x64xf32, #tpu.memory_space<vmem>>, vector<32x64xf32>
    tpu.vector_store %arg7[%c0_6, %c0_7], %8 {strides = array<i32>} : memref<32x64xf32, #tpu.memory_space<vmem>>, vector<32x64xf32>,
    %c0_i32_8 = arith.constant 0 : i32
    %10 = arith.cmpi eq, %arg2, %c0_i32_8 : i32
    %11 = arith.extui %10 : i1 to i32
    %c0_i32_9 = arith.constant 0 : i32
    %12 = arith.cmpi ne, %11, %c0_i32_9 : i32
    scf.if %12 {
      %c0_10 = arith.constant 0 : index
      %c0_11 = arith.constant 0 : index
      %13 = vector.load %arg7[%c0_10, %c0_11] : memref<32x64xf32, #tpu.memory_space<vmem>>, vector<32x64xf32>
      %c0_12 = arith.constant 0 : index
      %c0_13 = arith.constant 0 : index
      %14 = vector.load %arg5[%c0_12, %c0_13] : memref<1x64xf32, #tpu.memory_space<vmem>>, vector<1x64xf32>
      %15 = vector.broadcast %14 : vector<1x64xf32> to vector<32x64xf32>
      %16 = arith.addf %13, %15 : vector<32x64xf32>
      %c0_14 = arith.constant 0 : index
      %c0_15 = arith.constant 0 : index
      %17 = vector.load %arg6[%c0_14, %c0_15] : memref<32x64xf32, #tpu.memory_space<vmem>>, vector<32x64xf32>
      tpu.vector_store %arg6[%c0_14, %c0_15], %16 {strides = array<i32>} : memref<32x64xf32, #tpu.memory_space<vmem>>, vector<32x64xf32>,
    } else {
    }
    return
  }
  func.func @transform_0(%arg0: i32, %arg1: i32, %arg2: i32) -> (i32, i32) {
    %c0_i32 = arith.constant 0 : i32
    return %arg0, %arg2 : i32, i32
  }
  func.func @transform_1(%arg0: i32, %arg1: i32, %arg2: i32) -> (i32, i32) {
    %c0_i32 = arith.constant 0 : i32
    return %arg2, %arg1 : i32, i32
  }
  func.func @transform_2(%arg0: i32, %arg1: i32, %arg2: i32) -> (i32, i32) {
    %c0_i32 = arith.constant 0 : i32
    %c0_i32_0 = arith.constant 0 : i32
    return %c0_i32, %arg1 : i32, i32
  }
  func.func @transform_3(%arg0: i32, %arg1: i32, %arg2: i32) -> (i32, i32) {
    %c0_i32 = arith.constant 0 : i32
    return %arg0, %arg1 : i32, i32
  }
}

</mosaic_0001>

<bundles_post_ra>
// kernel: tpu_custom_call.1
= control target key start
LH: loop header
LB: loop body
LE: loop exit
PB: predicated region body
PF: predicated region fallthrough
CT: control target
= control target key end

     0   :  { %8 = vsyncpa [#allocation4], 0  ;;  %s316_s0 = inlined_call_operand.hbm [shape: f32[32,32], index: 0, kind: input, shape index: {}]   ;;  %s317_s1 = inlined_call_operand.hbm [shape: bf16[32,64], index: 1, kind: input, shape index: {}]   ;;  %s318_s2 = inlined_call_operand.vmem [shape: f32[1,64], index: 2, kind: input, shape index: {}]   ;;  %s319_s3 = inlined_call_operand.hbm [shape: f32[32,64], index: 3, kind: output, shape index: {}]  }
   0x1   :  { %9 = vsyncpa [#allocation7], 0 }
   0x2   :  { %10 = vsyncpa [#allocation5], 0  ;;  %s15_s14 = sshll.u32 %s316_s0, 4  ;;  %s258_s15 = smov [#allocation3]   ;;  %s16_s14 = int_to_ptr.hbm [resolvable:$true] %s15_s14 }
   0x3   :  { %s17_s16 = sshll.u32 %s258_s15, 4  ;;  %s28_s19 = sshll.u32 %s317_s1, 4  ;;  %s18_s16 = int_to_ptr.vmem [resolvable:$true] %s17_s16  ;;  %s29_s19 = int_to_ptr.hbm [resolvable:$true] %s28_s19 }
   0x4   :  { %s259_s20 = smov 128   ;;  %s260_s21 = smov 8  }
   0x5   :  { %23 = dma.hbm_to_vmem [thread:$0]  %s16_s14, 512, %s18_s16, [#allocation4], %s259_s20, %s259_s20, %s260_s21  }
   0x6   :  { %s261_s22 = smov [#allocation6]   ;;  %s262_s24 = smov 64  }
   0x7   :  { %s30_s23 = sshll.u32 %s261_s22, 4  ;;  %s263_s0 = smov 4   ;;  %s31_s23 = int_to_ptr.vmem [resolvable:$true] %s30_s23 }
   0x8   :  { %36 = dma.hbm_to_vmem [thread:$0]  %s29_s19, 256, %s31_s23, [#allocation7], %s262_s24, %s262_s24, %s263_s0  }
   0x9   :  { %252 = dma.done.wait [#allocation4], 512  }
   0xa   :  { %253 = vsyncadd [#allocation4], 4294966784 }
   0xb   :  { %254 = dma.done.wait [#allocation7], 256  }
   0xc   :  { %255 = vsyncadd [#allocation7], 4294967040  ;;  %vm52_vm0 = vcmask 523264   ;;  %v264_v0 = vmov 0.0   ;;  %v168_v1 = vld [vmem:[#allocation6 + $0x8] sm:$0xff]  ;;  %v167_v2 = vld [vmem:[#allocation6] sm:$0xff] }
   0xd   :  { %53 = vst.msk [vmem:[#allocation2] sm:$0xff] %vm52_vm0, %v264_v0  ;;  %v57_v3 = vld [vmem:[#allocation3] sm:$0xff]  ;;  %v58_v4 = vld [vmem:[#allocation3 + $0x8] sm:$0xff]  ;;  %96 = vmatpush.bf16.msra.mxu0 %v168_v1  ;;  %169 = vmatpush.bf16.msra.mxu1 %v168_v1  ;;  %v59_v5 = vld [vmem:[#allocation3 + $0x10] sm:$0xff]  ;;  %vm83_vm1 = vcmask 261120   ;;  %s265_s26 = smov [#allocation8]  }
   0xe   :  { %54 = vst.msk [vmem:[#allocation2 + $0x8] sm:$0xff] %vm52_vm0, %v264_v0  ;;  %v60_v6 = vld [vmem:[#allocation3 + $0x18] sm:$0xff]  ;;  %v65_v7 = vpack.c.bf16 %v58_v4, %v57_v3  ;;  %v179_v17 = vld [vmem:[%s318_s2] ss:$0 sm:$0xff]  ;;  %s141_s27 = sshll.u32 %s265_s26, 4  ;;  %s143_s29 = sshll.u32 %s319_s3, 4  ;;  %s142_s27 = int_to_ptr.vmem [resolvable:$true] %s141_s27  ;;  %s144_s29 = int_to_ptr.hbm [resolvable:$true] %s143_s29 }
   0xf   :  { %55 = vst.msk [vmem:[#allocation2 + $0x10] sm:$0xff] %vm52_vm0, %v264_v0  ;;  %v66_v8 = vpack.c.bf16 %v60_v6, %v59_v5 }
  0x10   :  { %56 = vst.msk [vmem:[#allocation2 + $0x18] sm:$0xff] %vm52_vm0, %v264_v0 }
  0x11   :  { %97 = vmatpush.bf16.msra.mxu0 %v167_v2  ;;  %170 = vmatpush.bf16.msra.mxu1 %v167_v2 }
  0x14   :  { %165 = vmatmul.msk.bf16.vlgmr.msra.gmra.mxu0 %vm83_vm1, %v65_v7  ;;  %166 = vmatmul.msk.bf16.vlgmr.msra.gmra.mxu1 %vm83_vm1, %v66_v8  ;;  %v67_v9 = vld [vmem:[#allocation2] sm:$0xff] }
  0x15   :  { %v68_v15 = vld [vmem:[#allocation2 + $0x8] sm:$0xff] }
  0x16   :  { %v69_v10 = vld [vmem:[#allocation2 + $0x10] sm:$0xff] }
  0x17   :  { %v70_v16 = vld [vmem:[#allocation2 + $0x18] sm:$0xff] }
  0x91   :  { %v99_v11 = vpop.f32.mrf.mxu0  ;;  %v104_v12 = vpop.f32.mrf.mxu1 }
  0x92   :  { %v109_v13 = vadd.f32 %v99_v11, %v67_v9  ;;  %v111_v14 = vadd.f32 %v104_v12, %v69_v10 }
  0x94   :  { %114 = vst.msk [vmem:[#allocation2] sm:$0xff] %vm52_vm0, %v109_v13 }
  0x95   :  { %116 = vst.msk [vmem:[#allocation2 + $0x10] sm:$0xff] %vm52_vm0, %v111_v14 }
  0x99   :  { %v101_v18 = vpop.f32.mrf.mxu0  ;;  %v106_v19 = vpop.f32.mrf.mxu1 }
  0x9a   :  { %v110_v20 = vadd.f32 %v101_v18, %v68_v15  ;;  %v112_v21 = vadd.f32 %v106_v19, %v70_v16 }
  0x9b   :  { %v121_v22 = vld [vmem:[#allocation2] sm:$0xff] }
  0x9c   :  { %115 = vst.msk [vmem:[#allocation2 + $0x8] sm:$0xff] %vm52_vm0, %v110_v20  ;;  %v123_v23 = vld [vmem:[#allocation2 + $0x10] sm:$0xff]  ;;  %v129_v24 = vadd.f32 %v179_v17, %v121_v22 }
  0x9d   :  { %117 = vst.msk [vmem:[#allocation2 + $0x18] sm:$0xff] %vm52_vm0, %v112_v21  ;;  %v131_v25 = vadd.f32 %v179_v17, %v123_v23 }
  0x9e   :  { %133 = vst.msk [vmem:[#allocation8] sm:$0xff] %vm52_vm0, %v129_v24 }
  0x9f   :  { %135 = vst.msk [vmem:[#allocation8 + $0x10] sm:$0xff] %vm52_vm0, %v131_v25 }
  0xa3   :  { %v122_v26 = vld [vmem:[#allocation2 + $0x8] sm:$0xff] }
  0xa4   :  { %v124_v27 = vld [vmem:[#allocation2 + $0x18] sm:$0xff]  ;;  %v130_v28 = vadd.f32 %v179_v17, %v122_v26 }
  0xa5   :  { %v132_v29 = vadd.f32 %v179_v17, %v124_v27 }
  0xa6   :  { %134 = vst.msk [vmem:[#allocation8 + $0x8] sm:$0xff] %vm52_vm0, %v130_v28 }
  0xa7   :  { %136 = vst.msk [vmem:[#allocation8 + $0x18] sm:$0xff] %vm52_vm0, %v132_v29 }
  0xa8   :  { %149 = dma.vmem_to_hbm [thread:$0]  %s142_s27, 512, %s144_s29, [#allocation5], %s259_s20, %s259_s20, %s260_s21  }
  0xa9   :  { %256 = dma.done.wait [#allocation5], 512  }
  0xaa   :  { %257 = vsyncadd [#allocation5], 4294966784 }
  0xab   :  { %154 = vsyncpa [#allocation4], 1 }
  0xac   :  { %155 = vsyncpa [#allocation7], 1 }
  0xad   :  { %156 = vsyncpa [#allocation5], 1 }

</bundles_post_ra>
